<compile_context>
chip_gen: v7x
topology: tpu7x:2x2x1
jax: 0.10.0
libtpu: 0.0.40
codegen_flags: <defaults>
</compile_context>

<pallas_src>
import jax
import jax.numpy as jnp
from jax.experimental import pallas as pl
from jax.experimental.pallas import tpu as pltpu


def _onehot_kernel(x_ref, o_ref):
    """x_ref: (B, Tt) int32 in VMEM;  o_ref: (B, Q, Tt) float in VMEM."""
    Q = o_ref.shape[1]
    codes = x_ref[...][:, None, :]                                # (B, 1, Tt)
    # Lane-constant q index (sublane axis); broadcast over B and lanes is free
    # in the VPU compare — no (Q, Tt) materialized iota.
    q_ids = jax.lax.broadcasted_iota(jnp.int32, (1, Q, 1), 1)     # (1, Q, 1)
    o_ref[...] = (q_ids == codes).astype(o_ref.dtype)             # (B, Q, Tt)


def _round_up(x: int, m: int) -> int:
    return ((x + m - 1) // m) * m


def _pick_time_tile(B: int, Q: int, T: int, out_itemsize: int,
                    requested: int, vmem_budget_bytes: int) -> int:
    """Largest 128-multiple time tile whose double-buffered blocks fit budget."""
    T_pad = _round_up(max(T, 1), 128)
    Tt = min(_round_up(max(requested, 128), 128), T_pad)
    # Shrink until 2x (output block + input block) fits the VMEM budget.
    while Tt > 128 and 2 * (B * Q * Tt * out_itemsize + B * Tt * 4) > vmem_budget_bytes:
        Tt -= 128
    # Give both v7x TensorCores work when there is more than one tile's worth.
    if T_pad > 128 and pl.cdiv(T, Tt) < 2:
        Tt = max(128, _round_up(T_pad // 2, 128))
    return Tt


def preprocess_one_hot(
    wav_compand: jax.Array,
    n_quant: int,
    *,
    time_tile: int = 1024,
    out_dtype=jnp.float32,
    vmem_budget_bytes: int = 24 * 1024 * 1024,
) -> jax.Array:
    """Equivalent of PreProcess.forward: (B, T) int -> (B, Q, T) one-hot."""
    wav_i32 = wav_compand.astype(jnp.int32)   # PyTorch .long(); i32 suffices on TPU
    B, T = wav_i32.shape
    Q = int(n_quant)
    out_itemsize = jnp.dtype(out_dtype).itemsize

    Tt = _pick_time_tile(B, Q, T, out_itemsize, time_tile, vmem_budget_bytes)
    grid = (pl.cdiv(T, Tt),)   # ragged last block is masked by Pallas

    # Raise scoped VMEM enough for the double-buffered blocks (v5e default is
    # only 16 MiB); 32 MiB floor is safe on every generation incl. v7x.
    vmem_limit_bytes = int(max(32 * 1024 * 1024, vmem_budget_bytes + 8 * 1024 * 1024))

    return pl.pallas_call(
        _onehot_kernel,
        out_shape=jax.ShapeDtypeStruct((B, Q, T), out_dtype),
        grid_spec=pltpu.PrefetchScalarGridSpec(
            num_scalar_prefetch=0,
            grid=grid,
            in_specs=[pl.BlockSpec((B, Tt), lambda t: (0, t))],
            out_specs=pl.BlockSpec((B, Q, Tt), lambda t: (0, 0, t)),
        ),
        compiler_params=pltpu.CompilerParams(
            # Time tiles are independent -> megacore-shardable on v7x.
            dimension_semantics=("parallel",),
            vmem_limit_bytes=vmem_limit_bytes,
        ),
    )(wav_i32)


def _reference_one_hot(wav_compand, n_quant):
    """Pure-JAX reference mirroring gather_md(eye(Q), 0, wav).permute(1, 0, 2)."""
    eye = jnp.eye(n_quant, dtype=jnp.float32)        # registered buffer in the module
    gathered = eye[wav_compand.astype(jnp.int32)]    # (B, T, Q)
    return jnp.transpose(gathered, (0, 2, 1))        # (B, Q, T)


if __name__ == "__main__":
    key = jax.random.PRNGKey(0)

    # --- 1) Tiled path, 128-multiple T, fp32 output (matches torch.eye) ---
    B, T, Q = 2, 256, 16
    wav = jax.random.randint(key, (B, T), minval=0, maxval=Q, dtype=jnp.int32)
    out = jax.block_until_ready(preprocess_one_hot(wav, Q, time_tile=128))
    ref = _reference_one_hot(wav, Q)
    assert out.shape == (B, Q, T)
    assert out.dtype == jnp.float32
    assert bool(jnp.all(out == ref))
    assert bool(jnp.all(out.sum(axis=1) == 1.0))   # every column a valid one-hot

    # --- 2) Ragged T (not a 128 multiple): exercises the masked last block ---
    B2, T2, Q2 = 2, 200, 8
    wav2 = jax.random.randint(
        jax.random.PRNGKey(1), (B2, T2), minval=0, maxval=Q2, dtype=jnp.int32
    )
    out2 = jax.block_until_ready(preprocess_one_hot(wav2, Q2, time_tile=128))
    ref2 = _reference_one_hot(wav2, Q2)
    assert out2.shape == (B2, Q2, T2)
    assert bool(jnp.all(out2 == ref2))
    assert bool(jnp.all(out2.sum(axis=1) == 1.0))

    # --- 3) bf16 output: halves the dominant HBM write; 0/1 exact in bf16 ---
    out3 = jax.block_until_ready(
        preprocess_one_hot(wav, Q, time_tile=128, out_dtype=jnp.bfloat16)
    )
    assert out3.dtype == jnp.bfloat16
    assert bool(jnp.all(out3.astype(jnp.float32) == ref))

    print("KERNEL_OK")
</pallas_src>

<mosaic_0001>
module attributes {stable_mosaic.version = 11 : i64} {
  func.func @_onehot_kernel(%arg0: i32, %arg1: memref<2x128xi32, #tpu.memory_space<vmem>>, %arg2: memref<2x16x128xf32, #tpu.memory_space<vmem>>) attributes {dimension_semantics = [#tpu.dimension_semantics<parallel>], iteration_bounds = array<i64: 2>, scalar_prefetch = 0 : i64, scratch_operands = 0 : i64, tpu.core_type = #tpu.core_type<tc>, window_params = [{transform_indices = @transform_0, window_bounds = array<i64: 2, 128>}, {transform_indices = @transform_1, window_bounds = array<i64: 2, 16, 128>}]} {
    %c0 = arith.constant 0 : index
    %c0_0 = arith.constant 0 : index
    %0 = vector.load %arg1[%c0, %c0_0] : memref<2x128xi32, #tpu.memory_space<vmem>>, vector<2x128xi32>
    %1 = vector.shape_cast %0 : vector<2x128xi32> to vector<2x1x128xi32>
    %2 = tpu.iota {dimensions = array<i32: 1>} : vector<1x16x1xi32>
    %3 = vector.broadcast %2 : vector<1x16x1xi32> to vector<2x16x128xi32>
    %4 = vector.broadcast %1 : vector<2x1x128xi32> to vector<2x16x128xi32>
    %5 = arith.cmpi eq, %3, %4 : vector<2x16x128xi32>
    %6 = arith.extui %5 : vector<2x16x128xi1> to vector<2x16x128xi32>
    %7 = arith.sitofp %6 : vector<2x16x128xi32> to vector<2x16x128xf32>
    %c0_1 = arith.constant 0 : index
    %c0_2 = arith.constant 0 : index
    %c0_3 = arith.constant 0 : index
    %8 = vector.load %arg2[%c0_1, %c0_2, %c0_3] : memref<2x16x128xf32, #tpu.memory_space<vmem>>, vector<2x16x128xf32>
    tpu.vector_store %arg2[%c0_1, %c0_2, %c0_3], %7 {strides = array<i32>} : memref<2x16x128xf32, #tpu.memory_space<vmem>>, vector<2x16x128xf32>,
    return
  }
  func.func @transform_0(%arg0: i32) -> (i32, i32) {
    %c0_i32 = arith.constant 0 : i32
    %c0_i32_0 = arith.constant 0 : i32
    return %c0_i32, %arg0 : i32, i32
  }
  func.func @transform_1(%arg0: i32) -> (i32, i32, i32) {
    %c0_i32 = arith.constant 0 : i32
    %c0_i32_0 = arith.constant 0 : i32
    %c0_i32_1 = arith.constant 0 : i32
    return %c0_i32, %c0_i32_0, %arg0 : i32, i32, i32
  }
}

</mosaic_0001>

<bundles_post_ra>
// kernel: tpu_custom_call.1
= control target key start
LH: loop header
LB: loop body
LE: loop exit
PB: predicated region body
PF: predicated region fallthrough
CT: control target
= control target key end

     0   :  { %6 = vsyncpa [#allocation3], 0  ;;  %s615_s0 = inlined_call_operand.hbm [shape: s32[2,256], index: 0, kind: input, shape index: {}]   ;;  %s616_s1 = inlined_call_operand.hbm [shape: f32[2,16,256], index: 1, kind: output, shape index: {}]  }
   0x1   :  { %8 = vsyncpa [#allocation3 + $0x1], 0 }
   0x2   :  { %9 = vsyncpa [#allocation4], 0 }
   0x3   :  { %11 = vsyncpa [#allocation4 + $0x1], 0  ;;  %s451_s6 = smov 0   ;;  %s453_s7 = smov 0  }
   0x4   :  { %s455_s8 = smov 0   ;;  %s457_s9 = smov 0  }
   0x5 LB: > { %s472_s10 = sadd.s32 4294967295, %s432_s9   ;;  %s268_s11 = sadd.s32 4294967294, %s432_s9   ;;  %s432_s9 = sphi %s457_s9, %s631_s9   ;;  %s428_s8 = sphi %s455_s8, %s630_s8   ;;  %s424_s7 = sphi %s453_s7, %s629_s7   ;;  %s420_s6 = sphi %s451_s6, %s628_s6  }
   0x6   : > { %s476_s12 = sadd.s32 1, %s432_s9   ;;  %s24_s13 = sadd.s32 1, %s428_s8 }
   0x7   : > { %s21_s14 = ssub.s32 %s432_s9, %s476_s12  ;;  %p31_p0 = scmp.ne.s32.totalorder %s428_s8, %s424_s7 }
   0x8   : > { %p22_p1 = scmp.eq.s32.totalorder %s21_s14, 0  ;;  %p32_p2 = scmp.eq.s32.totalorder %s432_s9, 0 }
   0x9   : > { %p37_p3 = scmp.ne.s32.totalorder %s424_s7, %s420_s6  ;;  %p38_p4 = scmp.eq.s32.totalorder %s472_s10, 0 }
   0xa   : > { %s488_s15 = scalar_select %p22_p1, %s428_s8, %s24_s13  }
   0xb   : > { %p490_p5 = por %p32_p2, %p31_p0  ;;  %p494_p6 = por %p38_p4, %p37_p3 }
   0xc   : > { %p61_p7 = scmp.eq.s32.totalorder %s472_s10, 1  ;;  %p67_p8 = scmp.eq.s32.totalorder %s268_s11, 1 }
   0xd   : > { %p297_p10 = scmp.lt.s32.totalorder %s432_s9, 2  ;;  %s87_s20 = sand.u32 1, %s428_s8  }
   0xe   : > { %p501_p11 = por %p61_p7, %p31_p0  ;;  %p505_p12 = por %p67_p8, %p37_p3 }
   0xf   : > { %s272_s21 = sshll.u32 %s432_s9, 5  ;;  %s271_s22 = sshll.u32 %s87_s20, 1 }
  0x10   : > { %s620_s18 = scalar_select %p501_p11, 1, 0 }
  0x11   : > { %s621_s19 = scalar_select %p505_p12, 1, 0 }
  0x12   : > { %s514_s25 = scalar_lea.hbm %s615_s0, %s272_s21  ;;  %s91_s26 = scalar_lea.vmem [#allocation2], %s271_s22 }
  0x13   : > { %s98_s27 = sshll.u32 %s91_s26, 4  ;;  %p518_p13 = pnand %p297_p10, %p490_p5  ;;  %s522_s27 = int_to_ptr.vmem [resolvable:$true] %s98_s27 }
  0x14   : > { %s88_s29 = scalar_lea.sflag [#allocation3], %s87_s20  ;;  %s336_s30 = scalar_lea.hbm %s514_s25, 32 }
  0x15   : > { %p337_p2 = scmp.ne.s32.totalorder %s514_s25, %s336_s30  ;;  %p338_p3 = pneg %p518_p13 }
  0x16   : > { %s341_s4 = scalar_lea.hbm %s615_s0, 64  ;;  %p342_p5 = scmp.lt.u32.totalorder %s514_s25, %s615_s0 }
  0x17   : > { %p339_p4 = pnand %p338_p3, %p337_p2  ;;  %p343_p8 = scmp.lt.u32.totalorder %s341_s4, %s336_s30 }
  0x18   : > { %p345_p9 = scmp.lt.u32.totalorder %s336_s30, %s514_s25 }
  0x19   : > { %p340_p7 = pneg %p339_p4  ;;  %p344_p10 = por %p343_p8, %p342_p5 }
  0x1b   : > { %p346_p0 = por %p345_p9, %p344_p10 }
  0x1d   : > { %p347_p1 = pnand %p346_p0, %p340_p7 }
  0x1f   : > { %350 = shalt.err (!%p347_p1)
}
  0x20   : > { %s351_s13 = scalar_lea.vmem %s522_s27, 32  ;;  %s434_s14 = smov [#allocation2]  }
  0x21   : > { %p352_p2 = scmp.ne.s32.totalorder %s522_s27, %s351_s13  ;;  %s356_s16 = sshll.u32 %s434_s14, 4  ;;  %s357_s16 = int_to_ptr.vmem [resolvable:$false] %s356_s16 }
  0x22   : > { %s358_s20 = scalar_lea.vmem %s357_s16, 64  ;;  %p359_p11 = scmp.lt.s32.totalorder %s522_s27, %s357_s16 }
  0x23   : > { %p354_p4 = pnand %p352_p2, %p338_p3  ;;  %p360_p5 = scmp.lt.s32.totalorder %s358_s20, %s351_s13 }
  0x25   : > { %p355_p12 = pneg %p354_p4  ;;  %p361_p8 = por %p360_p5, %p359_p11 }
  0x27   : > { %p362_p9 = pnand %p361_p8, %p355_p12 }
  0x29   : > { %365 = shalt.err (!%p362_p9)
}
  0x2a   : > { %292 = dma.hbm_to_vmem [thread:$0]  (!%p518_p13), %s514_s25, 32, %s522_s27, %s88_s29  }
  0x2b   : > { %p623_p0 = scmp.lt.s32.totalorder %s432_s9, 3  ;;  %p624_p1 = scmp.ge.s32.totalorder %s432_s9, 1 }
  0x2d   : > { %p104_p3 = pnand %p624_p1, %p623_p0 }
  0x2e   : > { %s556_s21 = sand.u32 (!%p104_p3), 1, %s424_s7  }
  0x2f   : > { %107 = sbr.rel (%p104_p3) target bundleno = 85 (0x55), region = 24  ;;  %s274_s22 = sshll.u32 (!%p104_p3), %s556_s21, 1 }
  0x30   : > { %s110_s23 = scalar_lea.sflag (!%p104_p3), [#allocation3], %s556_s21  ;;  %s113_s24 = scalar_lea.vmem (!%p104_p3), [#allocation2], %s274_s22 }
  0x36   : > { %411 = dma.done.wait (%p494_p6), %s110_s23, 32  }
  0x37   : > { %413 = vsyncadd (%p494_p6), %s110_s23, 4294967264  ;;  %v144_v0 = vlaneseq  ;;  %v435_v1 = vmov 1966171168   ;;  %s275_s25 = sshll.u32 %s556_s21, 5  ;;  %s282_s26 = sshll.u32 %s472_s10, 7  ;;  %v436_v14 = vmov 0.0  }
  0x38   : > { %v142_v2 = vunpack.c.l.s4 %v435_v1  ;;  %v276_v7 = vld.sshfl [vmem:[%s113_s24] sm:$0x11 pattern:$0x75316420]  ;;  %s131_s27 = scalar_lea.vmem [#allocation5], %s275_s25  ;;  %s569_s30 = scalar_lea.hbm %s616_s1, %s282_s26 }
  0x39   : > { %v145_v3 = vshrl.u32 %v144_v0, 7  ;;  %v140_v10 = vcombine.high %v276_v7, %v276_v7  ;;  %s195_s28 = sshll.u32 %s131_s27, 4  ;;  %s183_s10 = scalar_lea.sflag [#allocation4], %s556_s21  ;;  %s571_s28 = int_to_ptr.vmem [resolvable:$true] %s195_s28 }
  0x3a   : > { %v143_v4 = vunpack.c.0.s8 %v142_v2  ;;  %s366_s2 = scalar_lea.vmem %s571_s28, 512  ;;  %p625_p11 = scmp.ne.s32.totalorder %s620_s18, 0 }
  0x3b   : > { %v160_v6 = vsub.s32 0, %v145_v3  ;;  %v157_v9 = vadd.s32 8, %v145_v3  ;;  %p367_p6 = scmp.ne.s32.totalorder %s571_s28, %s366_s2  ;;  %s437_s3 = smov [#allocation5]  }
  0x3c   : > { %v146_v5 = vsub.s32 %v143_v4, %v145_v3  ;;  %s370_s4 = sshll.u32 %s437_s3, 4  ;;  %s371_s4 = int_to_ptr.vmem [resolvable:$false] %s370_s4 }
  0x3d   : > { %p368_p12 = pnand %p367_p6, %p625_p11  ;;  %s372_s5 = scalar_lea.vmem %s371_s4, 1024 }
  0x3e   : > { %v147_v8 = vrot.slane %v276_v7, %v146_v5  ;;  %v154_v12 = vrot.slane %v140_v10, %v146_v5  ;;  %p373_p7 = scmp.lt.s32.totalorder %s571_s28, %s371_s4  ;;  %p374_p10 = scmp.lt.s32.totalorder %s372_s5, %s366_s2 }
  0x3f   : > { %p369_p13 = pneg %p368_p12 }
  0x40   : > { %v161_v11 = vrot.slane %v147_v8, %v160_v6  ;;  %v165_v13 = vrot.slane %v154_v12, %v160_v6  ;;  %p375_p2 = por %p374_p10, %p373_p7 }
  0x42   : > { %vm166_vm0 = vcmp.eq.s32.totalorder %v145_v3, %v161_v11  ;;  %vm167_vm1 = vcmp.eq.s32.totalorder %v157_v9, %v161_v11  ;;  %vm168_vm2 = vcmp.eq.s32.totalorder %v145_v3, %v165_v13  ;;  %vm169_vm3 = vcmp.eq.s32.totalorder %v157_v9, %v165_v13  ;;  %p376_p4 = pnand %p375_p2, %p369_p13 }
  0x43   : > { %v277_v15 = vsel %vm166_vm0, 1.0, %v436_v14  ;;  %v278_v16 = vsel %vm167_vm1, 1.0, %v436_v14  ;;  %v279_v17 = vsel %vm168_vm2, 1.0, %v436_v14  ;;  %v280_v18 = vsel %vm169_vm3, 1.0, %v436_v14 }
  0x44   : > { %178 = vst [vmem:[%s131_s27] sm:$0xff] %v277_v15  ;;  %179 = vst [vmem:[%s131_s27 + $0x8] sm:$0xff] %v278_v16 }
  0x45   : > { %180 = vst [vmem:[%s131_s27 + $0x10] sm:$0xff] %v279_v17  ;;  %181 = vst [vmem:[%s131_s27 + $0x18] sm:$0xff] %v280_v18 }
  0x46   : > { %379 = shalt.err (!%p376_p4)
}
  0x47   : > { %s380_s11 = scalar_lea.hbm %s569_s30, 512  ;;  %s384_s16 = scalar_lea.hbm %s616_s1, 1024 }
  0x48   : > { %p381_p5 = scmp.ne.s32.totalorder %s569_s30, %s380_s11  ;;  %p385_p0 = scmp.lt.u32.totalorder %s569_s30, %s616_s1 }
  0x49   : > { %p386_p1 = scmp.lt.u32.totalorder %s384_s16, %s380_s11  ;;  %p388_p6 = scmp.lt.u32.totalorder %s380_s11, %s569_s30 }
  0x4a   : > { %p382_p8 = pnand %p381_p5, %p625_p11 }
  0x4b   : > { %p387_p3 = por %p386_p1, %p385_p0 }
  0x4c   : > { %p383_p9 = pneg %p382_p8 }
  0x4d   : > { %p389_p12 = por %p388_p6, %p387_p3 }
  0x4f   : > { %p390_p13 = pnand %p389_p12, %p383_p9 }
  0x51   : > { %393 = shalt.err (!%p390_p13)
}
  0x52   : > { %s438_s23 = smov 128   ;;  %s439_s24 = smov 256  }
  0x53   : > { %s440_s25 = smov 8  }
  0x54   : > { %287 = dma.vmem_to_hbm [thread:$0]  (%p625_p11), %s571_s28, 512, %s569_s30, %s183_s10, %s438_s23, %s439_s24, %s440_s25  }
  0x55 PF: > { %s210_s26 = sand.u32 1, %s420_s6   ;;  %p626_p7 = scmp.ne.s32.totalorder %s621_s19, 0 }
  0x56   : > { %p627_p10 = scmp.ge.s32.totalorder %s432_s9, 2  ;;  %s211_s27 = scalar_lea.sflag [#allocation4], %s210_s26 }
  0x58   : > { %p294_p2 = pnand %p627_p10, %p626_p7 }
  0x5a   : > { %415 = dma.done.wait (!%p294_p2), %s211_s27, 512  }
  0x5b   : > { %417 = vsyncadd (!%p294_p2), %s211_s27, 4294966784  ;;  %p14_p4 = scmp.ge.s32.totalorder %s476_s12, 4   ;;  %s628_s6 = smov %s424_s7 }
  0x5c   : > { %s629_s7 = smov %s428_s8  ;;  %s630_s8 = smov %s488_s15 }
  0x5d   : > { %s631_s9 = smov %s476_s12  ;;  %16 = sbr.rel (!%p14_p4) target bundleno = 5 (0x5), region = 69 }
  0x64   :  { %216 = vsyncpa [#allocation3], 1 }
  0x65   :  { %218 = vsyncpa [#allocation3 + $0x1], 1 }
  0x66   :  { %219 = vsyncpa [#allocation4], 1 }
  0x67   :  { %221 = vsyncpa [#allocation4 + $0x1], 1 }

</bundles_post_ra>
